<compile_context>
chip_gen: v7x
topology: tpu7x:2x2x1
jax: 0.10.0
libtpu: 0.0.40
codegen_flags: <defaults>
</compile_context>

<pallas_src>
import math

import jax
import jax.numpy as jnp
from jax.experimental import pallas as pl
from jax.experimental.pallas import tpu as pltpu


def _round_up(x, m):
    return ((x + m - 1) // m) * m


def _gelu_tanh(x):
    # TODO(synk): torch.nn.GELU default is erf-based; this is the tanh
    # approximation (== nn.GELU(approximate='tanh')), which lowers cleanly to
    # the EUP. Max deviation from exact GELU is ~1e-3.
    c = math.sqrt(2.0 / math.pi)
    return 0.5 * x * (1.0 + jnp.tanh(c * (x + 0.044715 * (x * x * x))))


def mlp_kernel(x_ref, w1_ref, b1_ref, w2_ref, b2_ref, o_ref, acc_ref):
    # x_ref:  (tm, Kp)     row tile of the (flattened) input
    # w1_ref: (Kp, th)     column block of fc1 weight (pre-transposed)
    # b1_ref: (1, th)      fc1 bias block
    # w2_ref: (th, Np)     row block of fc2 weight (pre-transposed)
    # b2_ref: (1, Np)      fc2 bias
    # o_ref:  (tm, Np)     output tile (resident across the hidden axis)
    # acc_ref:(tm, Np) f32 accumulator scratch
    h = pl.program_id(1)

    @pl.when(h == 0)
    def _():
        acc_ref[...] = jnp.zeros_like(acc_ref)

    # fc1 block + GELU (all on-chip; f32 accumulate on the MXU)
    hid = jnp.dot(x_ref[...], w1_ref[...], preferred_element_type=jnp.float32)
    hid = _gelu_tanh(hid + b1_ref[...])
    # TODO(synk): nn.Dropout is identity here (p=0.0 default / eval mode).

    # fc2 partial product, accumulated over hidden blocks
    acc_ref[...] += jnp.dot(hid.astype(w2_ref.dtype), w2_ref[...],
                            preferred_element_type=jnp.float32)

    @pl.when(h == pl.num_programs(1) - 1)
    def _():
        o_ref[...] = (acc_ref[...] + b2_ref[...]).astype(o_ref.dtype)


def mlp_forward(x, w1, b1, w2, b2, *, tm=128, th=512):
    """y = GELU(x @ w1.T + b1) @ w2.T + b2  (torch Mlp forward, dropout=identity).

    w1: (hidden, in_features), b1: (hidden,)   -- PyTorch nn.Linear layout
    w2: (out_features, hidden), b2: (out_features,)
    """
    orig_shape = x.shape
    k = orig_shape[-1]
    hdim, k_w = w1.shape
    n, hdim_w = w2.shape
    assert k_w == k and hdim_w == hdim

    x2d = x.reshape(-1, k)
    m = x2d.shape[0]

    # Tile sizes: sublane/lane aligned, but don't over-pad tiny inputs.
    tm_eff = min(tm, _round_up(m, 8))
    th_eff = min(th, _round_up(hdim, 128))

    m_pad = _round_up(m, tm_eff)
    k_pad = _round_up(k, 128)
    h_pad = _round_up(hdim, th_eff)
    n_pad = _round_up(n, 128)

    # One-time layout prep OUTSIDE the kernel:
    #  - pre-transpose weights so there is no in-kernel transpose,
    #  - zero-pad to lane-dense multiples of 128 (padded hidden columns give
    #    GELU(0)=0 and multiply zero rows of w2 -> exact no-op).
    x2d = jnp.pad(x2d, ((0, m_pad - m), (0, k_pad - k)))
    w1t = jnp.pad(w1.T, ((0, k_pad - k), (0, h_pad - hdim)))
    b1p = jnp.pad(b1, (0, h_pad - hdim)).reshape(1, h_pad)
    w2t = jnp.pad(w2.T, ((0, h_pad - hdim), (0, n_pad - n)))
    b2p = jnp.pad(b2, (0, n_pad - n)).reshape(1, n_pad)

    grid = (m_pad // tm_eff, h_pad // th_eff)

    y = pl.pallas_call(
        mlp_kernel,
        out_shape=jax.ShapeDtypeStruct((m_pad, n_pad), x.dtype),
        grid_spec=pltpu.PrefetchScalarGridSpec(
            num_scalar_prefetch=0,
            grid=grid,
            in_specs=[
                pl.BlockSpec((tm_eff, k_pad), lambda i, h: (i, 0)),   # x row tile
                pl.BlockSpec((k_pad, th_eff), lambda i, h: (0, h)),   # W1^T col block
                pl.BlockSpec((1, th_eff), lambda i, h: (0, h)),       # b1 block
                pl.BlockSpec((th_eff, n_pad), lambda i, h: (h, 0)),   # W2^T row block
                pl.BlockSpec((1, n_pad), lambda i, h: (0, 0)),        # b2
            ],
            out_specs=pl.BlockSpec((tm_eff, n_pad), lambda i, h: (i, 0)),
            scratch_shapes=[pltpu.VMEM((tm_eff, n_pad), jnp.float32)],
        ),
        compiler_params=pltpu.CompilerParams(
            dimension_semantics=("parallel", "arbitrary"),
        ),
    )(x2d, w1t, b1p, w2t, b2p)

    y = y[:m, :n]
    return y.reshape(*orig_shape[:-1], n)


def init_mlp_params(key, in_features, hidden_features, out_features,
                    dtype=jnp.float32):
    """Deterministic init mimicking torch.nn.Linear defaults (U(+-1/sqrt(fan_in)))."""
    k1, k2, k3, k4 = jax.random.split(key, 4)

    def linear_init(kw, kb, fan_in, fan_out):
        bound = 1.0 / math.sqrt(fan_in)
        w = jax.random.uniform(kw, (fan_out, fan_in), dtype, -bound, bound)
        b = jax.random.uniform(kb, (fan_out,), dtype, -bound, bound)
        return w, b

    w1, b1 = linear_init(k1, k2, in_features, hidden_features)
    w2, b2 = linear_init(k3, k4, hidden_features, out_features)
    return w1, b1, w2, b2


if __name__ == "__main__":
    key = jax.random.PRNGKey(0)
    k_x, k_p = jax.random.split(key)

    in_features, hidden_features, out_features = 32, 64, 32
    batch, seq = 2, 16
    x = jax.random.normal(k_x, (batch, seq, in_features), dtype=jnp.float32)

    w1, b1, w2, b2 = init_mlp_params(k_p, in_features, hidden_features,
                                     out_features)

    y = mlp_forward(x, w1, b1, w2, b2)
    jax.block_until_ready(y)

    # Pure-JAX reference (same math / same tanh-GELU as the kernel).
    y_ref = _gelu_tanh(x @ w1.T + b1) @ w2.T + b2

    assert y.shape == (batch, seq, out_features)
    # f32 matmuls go through MXU bf16 passes; keep a small tolerance headroom.
    assert jnp.allclose(y, y_ref, atol=1e-3, rtol=1e-3), float(
        jnp.max(jnp.abs(y - y_ref)))

    print("KERNEL_OK")
</pallas_src>

<mosaic_0001>
module attributes {stable_mosaic.version = 11 : i64} {
  func.func @mlp_kernel(%arg0: i32, %arg1: i32, %arg2: memref<32x128xf32, #tpu.memory_space<vmem>>, %arg3: memref<128x128xf32, #tpu.memory_space<vmem>>, %arg4: memref<1x128xf32, #tpu.memory_space<vmem>>, %arg5: memref<128x128xf32, #tpu.memory_space<vmem>>, %arg6: memref<1x128xf32, #tpu.memory_space<vmem>>, %arg7: memref<32x128xf32, #tpu.memory_space<vmem>>, %arg8: memref<32x128xf32, #tpu.memory_space<vmem>>) attributes {dimension_semantics = [#tpu.dimension_semantics<parallel>, #tpu.dimension_semantics<arbitrary>], iteration_bounds = array<i64: 1, 1>, scalar_prefetch = 0 : i64, scratch_operands = 1 : i64, tpu.core_type = #tpu.core_type<tc>, window_params = [{transform_indices = @transform_0, window_bounds = array<i64: 32, 128>}, {transform_indices = @transform_1, window_bounds = array<i64: 128, 128>}, {transform_indices = @transform_2, window_bounds = array<i64: 1, 128>}, {transform_indices = @transform_3, window_bounds = array<i64: 128, 128>}, {pipeline_mode = #tpu.pipeline_mode<synchronous>, transform_indices = @transform_4, window_bounds = array<i64: 1, 128>}, {transform_indices = @transform_5, window_bounds = array<i64: 32, 128>}]} {
    %c0_i32 = arith.constant 0 : i32
    %0 = arith.cmpi eq, %arg1, %c0_i32 : i32
    %1 = arith.extui %0 : i1 to i32
    %c0_i32_0 = arith.constant 0 : i32
    %2 = arith.cmpi ne, %1, %c0_i32_0 : i32
    scf.if %2 {
      %cst_19 = arith.constant 0.000000e+00 : f32
      %30 = vector.broadcast %cst_19 : f32 to vector<32x128xf32>
      %c0_20 = arith.constant 0 : index
      %c0_21 = arith.constant 0 : index
      %31 = vector.load %arg8[%c0_20, %c0_21] : memref<32x128xf32, #tpu.memory_space<vmem>>, vector<32x128xf32>
      tpu.vector_store %arg8[%c0_20, %c0_21], %30 {strides = array<i32>} : memref<32x128xf32, #tpu.memory_space<vmem>>, vector<32x128xf32>,
    } else {
    }
    %c0 = arith.constant 0 : index
    %c0_1 = arith.constant 0 : index
    %3 = vector.load %arg2[%c0, %c0_1] : memref<32x128xf32, #tpu.memory_space<vmem>>, vector<32x128xf32>
    %c0_2 = arith.constant 0 : index
    %c0_3 = arith.constant 0 : index
    %4 = vector.load %arg3[%c0_2, %c0_3] : memref<128x128xf32, #tpu.memory_space<vmem>>, vector<128x128xf32>
    %cst = arith.constant dense<0.000000e+00> : vector<32x128xf32>
    %5 = tpu.matmul %3, %4, %cst {dimension_numbers = #tpu.dot_dimension_numbers<[1], [0], [0], [1], [0, 0, 1, 1], [], []>} : vector<32x128xf32>, vector<128x128xf32>, vector<32x128xf32> -> vector<32x128xf32>
    %c0_4 = arith.constant 0 : index
    %c0_5 = arith.constant 0 : index
    %6 = vector.load %arg4[%c0_4, %c0_5] : memref<1x128xf32, #tpu.memory_space<vmem>>, vector<1x128xf32>
    %7 = vector.broadcast %6 : vector<1x128xf32> to vector<32x128xf32>
    %8 = arith.addf %5, %7 : vector<32x128xf32>
    %cst_6 = arith.constant 5.000000e-01 : f32
    %9 = vector.broadcast %cst_6 : f32 to vector<32x128xf32>
    %10 = arith.mulf %9, %8 : vector<32x128xf32>
    %11 = arith.mulf %8, %8 : vector<32x128xf32>
    %12 = arith.mulf %11, %8 : vector<32x128xf32>
    %cst_7 = arith.constant 4.471500e-02 : f32
    %13 = vector.broadcast %cst_7 : f32 to vector<32x128xf32>
    %14 = arith.mulf %13, %12 : vector<32x128xf32>
    %15 = arith.addf %8, %14 : vector<32x128xf32>
    %cst_8 = arith.constant 0.797884583 : f32
    %16 = vector.broadcast %cst_8 : f32 to vector<32x128xf32>
    %17 = arith.mulf %16, %15 : vector<32x128xf32>
    %18 = math.tanh %17 : vector<32x128xf32>
    %cst_9 = arith.constant 1.000000e+00 : f32
    %19 = vector.broadcast %cst_9 : f32 to vector<32x128xf32>
    %20 = arith.addf %19, %18 : vector<32x128xf32>
    %21 = arith.mulf %10, %20 : vector<32x128xf32>
    %c0_10 = arith.constant 0 : index
    %c0_11 = arith.constant 0 : index
    %22 = vector.load %arg8[%c0_10, %c0_11] : memref<32x128xf32, #tpu.memory_space<vmem>>, vector<32x128xf32>
    %c0_12 = arith.constant 0 : index
    %c0_13 = arith.constant 0 : index
    %23 = vector.load %arg5[%c0_12, %c0_13] : memref<128x128xf32, #tpu.memory_space<vmem>>, vector<128x128xf32>
    %cst_14 = arith.constant dense<0.000000e+00> : vector<32x128xf32>
    %24 = tpu.matmul %21, %23, %cst_14 {dimension_numbers = #tpu.dot_dimension_numbers<[1], [0], [0], [1], [0, 0, 1, 1], [], []>} : vector<32x128xf32>, vector<128x128xf32>, vector<32x128xf32> -> vector<32x128xf32>
    %25 = arith.addf %22, %24 : vector<32x128xf32>
    %c0_15 = arith.constant 0 : index
    %c0_16 = arith.constant 0 : index
    %26 = vector.load %arg8[%c0_15, %c0_16] : memref<32x128xf32, #tpu.memory_space<vmem>>, vector<32x128xf32>
    tpu.vector_store %arg8[%c0_15, %c0_16], %25 {strides = array<i32>} : memref<32x128xf32, #tpu.memory_space<vmem>>, vector<32x128xf32>,
    %c0_i32_17 = arith.constant 0 : i32
    %27 = arith.cmpi eq, %arg1, %c0_i32_17 : i32
    %28 = arith.extui %27 : i1 to i32
    %c0_i32_18 = arith.constant 0 : i32
    %29 = arith.cmpi ne, %28, %c0_i32_18 : i32
    scf.if %29 {
      %c0_19 = arith.constant 0 : index
      %c0_20 = arith.constant 0 : index
      %30 = vector.load %arg8[%c0_19, %c0_20] : memref<32x128xf32, #tpu.memory_space<vmem>>, vector<32x128xf32>
      %c0_21 = arith.constant 0 : index
      %c0_22 = arith.constant 0 : index
      %31 = vector.load %arg6[%c0_21, %c0_22] : memref<1x128xf32, #tpu.memory_space<vmem>>, vector<1x128xf32>
      %32 = vector.broadcast %31 : vector<1x128xf32> to vector<32x128xf32>
      %33 = arith.addf %30, %32 : vector<32x128xf32>
      %c0_23 = arith.constant 0 : index
      %c0_24 = arith.constant 0 : index
      %34 = vector.load %arg7[%c0_23, %c0_24] : memref<32x128xf32, #tpu.memory_space<vmem>>, vector<32x128xf32>
      tpu.vector_store %arg7[%c0_23, %c0_24], %33 {strides = array<i32>} : memref<32x128xf32, #tpu.memory_space<vmem>>, vector<32x128xf32>,
    } else {
    }
    return
  }
  func.func @transform_0(%arg0: i32, %arg1: i32) -> (i32, i32) {
    %c0_i32 = arith.constant 0 : i32
    %c0_i32_0 = arith.constant 0 : i32
    return %arg0, %c0_i32 : i32, i32
  }
  func.func @transform_1(%arg0: i32, %arg1: i32) -> (i32, i32) {
    %c0_i32 = arith.constant 0 : i32
    %c0_i32_0 = arith.constant 0 : i32
    return %c0_i32, %arg1 : i32, i32
  }
  func.func @transform_2(%arg0: i32, %arg1: i32) -> (i32, i32) {
    %c0_i32 = arith.constant 0 : i32
    %c0_i32_0 = arith.constant 0 : i32
    return %c0_i32, %arg1 : i32, i32
  }
  func.func @transform_3(%arg0: i32, %arg1: i32) -> (i32, i32) {
    %c0_i32 = arith.constant 0 : i32
    %c0_i32_0 = arith.constant 0 : i32
    return %arg1, %c0_i32 : i32, i32
  }
  func.func @transform_4(%arg0: i32, %arg1: i32) -> (i32, i32) {
    %c0_i32 = arith.constant 0 : i32
    %c0_i32_0 = arith.constant 0 : i32
    %c0_i32_1 = arith.constant 0 : i32
    return %c0_i32, %c0_i32_0 : i32, i32
  }
  func.func @transform_5(%arg0: i32, %arg1: i32) -> (i32, i32) {
    %c0_i32 = arith.constant 0 : i32
    %c0_i32_0 = arith.constant 0 : i32
    return %arg0, %c0_i32 : i32, i32
  }
}

</mosaic_0001>

<bundles_post_ra>
// kernel: tpu_custom_call.1
= control target key start
LH: loop header
LB: loop body
LE: loop exit
PB: predicated region body
PF: predicated region fallthrough
CT: control target
= control target key end

     0   :  { %10 = vsyncpa [#allocation4], 0  ;;  %s770_s0 = inlined_call_operand.hbm [shape: f32[32,128], index: 0, kind: input, shape index: {}]   ;;  %s771_s1 = inlined_call_operand.hbm [shape: f32[128,128], index: 1, kind: input, shape index: {}]   ;;  %s772_s2 = inlined_call_operand.vmem [shape: f32[1,128], index: 2, kind: input, shape index: {}]   ;;  %s773_s3 = inlined_call_operand.hbm [shape: f32[128,128], index: 3, kind: input, shape index: {}]   ;;  %s774_s4 = inlined_call_operand.vmem [shape: f32[1,128], index: 4, kind: input, shape index: {}]   ;;  %s775_s5 = inlined_call_operand.hbm [shape: f32[32,128], index: 5, kind: output, shape index: {}]  }
   0x1   :  { %11 = vsyncpa [#allocation7], 0 }
   0x2   :  { %12 = vsyncpa [#allocation5], 0  ;;  %s661_s18 = smov [#allocation6]   ;;  %s662_s20 = smov [#allocation3]  }
   0x3   :  { %s30_s19 = sshll.u32 %s661_s18, 4  ;;  %s18_s21 = sshll.u32 %s662_s20, 4  ;;  %s31_s19 = int_to_ptr.vmem [resolvable:$true] %s30_s19  ;;  %s697_s21 = int_to_ptr.vmem [resolvable:$true] %s18_s21 }
   0x4   :  { %s567_s24 = scalar_lea.hbm %s771_s1, 2048 }
   0x5   :  { %p568_p0 = scmp.ne.s32.totalorder %s771_s1, %s567_s24  ;;  %p571_p1 = scmp.lt.u32.totalorder %s567_s24, %s771_s1 }
   0x7   :  { %p573_p2 = pnand %p571_p1, %p568_p0 }
   0x9   :  { %576 = shalt.err (!%p573_p2)
}
   0xa   :  { %s577_s29 = scalar_lea.vmem %s31_s19, 2048  ;;  %p582_p4 = scmp.lt.s32.totalorder %s31_s19, %s31_s19 }
   0xb   :  { %p578_p3 = scmp.ne.s32.totalorder %s31_s19, %s577_s29  ;;  %p583_p5 = scmp.lt.s32.totalorder %s577_s29, %s577_s29 }
   0xd   :  { %p584_p6 = por %p583_p5, %p582_p4 }
   0xf   :  { %p585_p7 = pnand %p584_p6, %p578_p3 }
  0x11   :  { %588 = shalt.err (!%p585_p7)
}
  0x12   :  { %s663_s30 = smov 128   ;;  %s664_s6 = smov 8  }
  0x13   :  { %36 = dma.hbm_to_vmem [thread:$0]  %s771_s1, 2048, %s31_s19, [#allocation7], %s663_s30, %s663_s30, %s664_s6  }
  0x14   :  { %s589_s11 = scalar_lea.hbm %s770_s0, 512 }
  0x15   :  { %p590_p8 = scmp.ne.s32.totalorder %s770_s0, %s589_s11  ;;  %p593_p9 = scmp.lt.u32.totalorder %s589_s11, %s770_s0 }
  0x17   :  { %p595_p10 = pnand %p593_p9, %p590_p8 }
  0x19   :  { %598 = shalt.err (!%p595_p10)
}
  0x1a   :  { %s599_s16 = scalar_lea.vmem %s697_s21, 512  ;;  %p604_p12 = scmp.lt.s32.totalorder %s697_s21, %s697_s21 }
  0x1b   :  { %p600_p11 = scmp.ne.s32.totalorder %s697_s21, %s599_s16  ;;  %p605_p13 = scmp.lt.s32.totalorder %s599_s16, %s599_s16 }
  0x1d   :  { %p606_p0 = por %p605_p13, %p604_p12 }
  0x1f   :  { %p607_p1 = pnand %p606_p0, %p600_p11 }
  0x21   :  { %610 = shalt.err (!%p607_p1)
}
  0x22   :  { %24 = dma.hbm_to_vmem [thread:$0]  %s770_s0, 512, %s697_s21, [#allocation4], %s663_s30, %s663_s30, %s664_s6  }
  0x23   :  { %s665_s18 = smov [#allocation8]   ;;  %s611_s23 = scalar_lea.hbm %s773_s3, 2048 }
  0x24   :  { %s44_s19 = sshll.u32 %s665_s18, 4  ;;  %p612_p2 = scmp.ne.s32.totalorder %s773_s3, %s611_s23  ;;  %s45_s19 = int_to_ptr.vmem [resolvable:$true] %s44_s19 }
  0x25   :  { %p615_p3 = scmp.lt.u32.totalorder %s611_s23, %s773_s3 }
  0x27   :  { %p617_p4 = pnand %p615_p3, %p612_p2 }
  0x29   :  { %620 = shalt.err (!%p617_p4)
}
  0x2a   :  { %s621_s28 = scalar_lea.vmem %s45_s19, 2048  ;;  %p626_p6 = scmp.lt.s32.totalorder %s45_s19, %s45_s19 }
  0x2b   :  { %p622_p5 = scmp.ne.s32.totalorder %s45_s19, %s621_s28  ;;  %p627_p7 = scmp.lt.s32.totalorder %s621_s28, %s621_s28 }
  0x2d   :  { %p628_p8 = por %p627_p7, %p626_p6 }
  0x2f   :  { %p629_p9 = pnand %p628_p8, %p622_p5 }
  0x31   :  { %632 = shalt.err (!%p629_p9)
}
  0x32   :  { %50 = dma.hbm_to_vmem [thread:$0]  %s773_s3, 2048, %s45_s19, [#allocation7], %s663_s30, %s663_s30, %s664_s6  }
  0x33   :  { %655 = dma.done.wait [#allocation4], 512  }
  0x34   :  { %656 = vsyncadd [#allocation4], 4294966784 }
  0x35   :  { %657 = dma.done.wait [#allocation7], 4096  }
  0x36   :  { %658 = vsyncadd [#allocation7], 4294963200  ;;  %v74_v0 = vld [vmem:[#allocation6] sm:$0xff]  ;;  %v75_v1 = vld [vmem:[#allocation6 + $0x8] sm:$0xff]  ;;  %s666_s8 = smov [#allocation9]  }
  0x37   :  { %v76_v2 = vld [vmem:[#allocation6 + $0x10] sm:$0xff]  ;;  %v489_v3 = vpack.c.bf16 %v75_v1, %v74_v0  ;;  %v77_v4 = vld [vmem:[#allocation6 + $0x18] sm:$0xff]  ;;  %v78_v6 = vld [vmem:[#allocation6 + $0x20] sm:$0xff]  ;;  %s358_s9 = sshll.u32 %s666_s8, 4  ;;  %s359_s9 = int_to_ptr.vmem [resolvable:$true] %s358_s9 }
  0x38   :  { %v493_v5 = vpack.c.bf16 %v77_v4, %v76_v2  ;;  %v79_v7 = vld [vmem:[#allocation6 + $0x28] sm:$0xff]  ;;  %v70_v9 = vld [vmem:[#allocation3] sm:$0xff]  ;;  %v80_v10 = vld [vmem:[#allocation6 + $0x30] sm:$0xff]  ;;  %s633_s10 = scalar_lea.vmem %s359_s9, 512  ;;  %p638_p11 = scmp.lt.s32.totalorder %s359_s9, %s359_s9 }
  0x39   :  { %490 = vmatprep.subr.bf16.mxu0 %v489_v3  ;;  %v497_v8 = vpack.c.bf16 %v79_v7, %v78_v6  ;;  %v81_v11 = vld [vmem:[#allocation6 + $0x38] sm:$0xff]  ;;  %445 = vmatprep.mubr.f32.mxu0 %v70_v9  ;;  %v222_v12 = vld [vmem:[#allocation8] sm:$0xff]  ;;  %v223_v13 = vld [vmem:[#allocation8 + $0x8] sm:$0xff]  ;;  %p634_p10 = scmp.ne.s32.totalorder %s359_s9, %s633_s10  ;;  %p639_p12 = scmp.lt.s32.totalorder %s633_s10, %s633_s10 }
  0x3a   :  { %492 = vmatpush3.bf16.msra.mxu0 %v489_v3  ;;  %v521_v14 = vpack.c.bf16 %v223_v13, %v222_v12  ;;  %v501_v15 = vpack.c.bf16 %v81_v11, %v80_v10  ;;  %v82_v16 = vld [vmem:[#allocation6 + $0x40] sm:$0xff]  ;;  %v83_v17 = vld [vmem:[#allocation6 + $0x48] sm:$0xff]  ;;  %v84_v19 = vld [vmem:[#allocation6 + $0x50] sm:$0xff] }
  0x3b   :  { %494 = vmatprep.subr.bf16.mxu0 %v493_v5  ;;  %v505_v18 = vpack.c.bf16 %v83_v17, %v82_v16  ;;  %v85_v20 = vld [vmem:[#allocation6 + $0x58] sm:$0xff]  ;;  %v86_v22 = vld [vmem:[#allocation6 + $0x60] sm:$0xff]  ;;  %v87_v23 = vld [vmem:[#allocation6 + $0x68] sm:$0xff]  ;;  %p640_p13 = por %p639_p12, %p638_p11 }
  0x3c   :  { %522 = vmatprep.subr.bf16.mxu1 %v521_v14  ;;  %v509_v21 = vpack.c.bf16 %v85_v20, %v84_v19  ;;  %v513_v24 = vpack.c.bf16 %v87_v23, %v86_v22  ;;  %v88_v25 = vld [vmem:[#allocation6 + $0x70] sm:$0xff]  ;;  %v89_v26 = vld [vmem:[#allocation6 + $0x78] sm:$0xff]  ;;  %v71_v28 = vld [vmem:[#allocation3 + $0x8] sm:$0xff] }
  0x3d   :  { %524 = vmatpush3.bf16.msra.mxu1 %v521_v14  ;;  %v517_v27 = vpack.c.bf16 %v89_v26, %v88_v25  ;;  %v72_v29 = vld [vmem:[#allocation3 + $0x10] sm:$0xff]  ;;  %v73_v30 = vld [vmem:[#allocation3 + $0x18] sm:$0xff]  ;;  %v226_v34 = vld [vmem:[#allocation8 + $0x20] sm:$0xff]  ;;  %p641_p0 = pnand %p640_p13, %p634_p10 }
  0x3e   :  { %496 = vmatpush3.bf16.msra.mxu0 %v493_v5  ;;  %v224_v31 = vld [vmem:[#allocation8 + $0x10] sm:$0xff]  ;;  %v225_v32 = vld [vmem:[#allocation8 + $0x18] sm:$0xff]  ;;  %v227_v35 = vld [vmem:[#allocation8 + $0x28] sm:$0xff] }
  0x3f   :  { %498 = vmatprep.subr.bf16.mxu0 %v497_v8  ;;  %v525_v33 = vpack.c.bf16 %v225_v32, %v224_v31  ;;  %v529_v36 = vpack.c.bf16 %v227_v35, %v226_v34  ;;  %v228_v37 = vld [vmem:[#allocation8 + $0x30] sm:$0xff]  ;;  %v229_v38 = vld [vmem:[#allocation8 + $0x38] sm:$0xff]  ;;  %v230_v40 = vld [vmem:[#allocation8 + $0x40] sm:$0xff] }
  0x40   :  { %v533_v39 = vpack.c.bf16 %v229_v38, %v228_v37  ;;  %v231_v41 = vld [vmem:[#allocation8 + $0x48] sm:$0xff]  ;;  %v232_v43 = vld [vmem:[#allocation8 + $0x50] sm:$0xff]  ;;  %v233_v44 = vld [vmem:[#allocation8 + $0x58] sm:$0xff] }
  0x41   :  { %526 = vmatprep.subr.bf16.mxu1 %v525_v33  ;;  %v537_v42 = vpack.c.bf16 %v231_v41, %v230_v40  ;;  %v541_v45 = vpack.c.bf16 %v233_v44, %v232_v43  ;;  %v234_v46 = vld [vmem:[#allocation8 + $0x60] sm:$0xff]  ;;  %v235_v47 = vld [vmem:[#allocation8 + $0x68] sm:$0xff]  ;;  %v236_v49 = vld [vmem:[#allocation8 + $0x70] sm:$0xff] }
  0x42   :  { %500 = vmatpush3.bf16.msra.mxu0 %v497_v8  ;;  %528 = vmatpush3.bf16.msra.mxu1 %v525_v33  ;;  %v545_v48 = vpack.c.bf16 %v235_v47, %v234_v46  ;;  %v237_v50 = vld [vmem:[#allocation8 + $0x78] sm:$0xff]  ;;  %v371_v52 = vld [vmem:[%s772_s2] ss:$0 sm:$0xff] }
  0x43   :  { %502 = vmatprep.subr.bf16.mxu0 %v501_v15  ;;  %530 = vmatprep.subr.bf16.mxu1 %v529_v36  ;;  %v549_v51 = vpack.c.bf16 %v237_v50, %v236_v49  ;;  %v372_v33 = vld [vmem:[%s774_s4] ss:$0 sm:$0xff] }
  0x46   :  { %504 = vmatpush3.bf16.msra.mxu0 %v501_v15  ;;  %532 = vmatpush3.bf16.msra.mxu1 %v529_v36 }
  0x47   :  { %506 = vmatprep.subr.bf16.mxu0 %v505_v18  ;;  %534 = vmatprep.subr.bf16.mxu1 %v533_v39 }
  0x4a   :  { %508 = vmatpush3.bf16.msra.mxu0 %v505_v18  ;;  %536 = vmatpush3.bf16.msra.mxu1 %v533_v39 }
  0x4b   :  { %510 = vmatprep.subr.bf16.mxu0 %v509_v21  ;;  %538 = vmatprep.subr.bf16.mxu1 %v537_v42 }
  0x4e   :  { %512 = vmatpush3.bf16.msra.mxu0 %v509_v21  ;;  %540 = vmatpush3.bf16.msra.mxu1 %v537_v42 }
  0x4f   :  { %514 = vmatprep.subr.bf16.mxu0 %v513_v24  ;;  %542 = vmatprep.subr.bf16.mxu1 %v541_v45 }
  0x52   :  { %516 = vmatpush3.bf16.msra.mxu0 %v513_v24  ;;  %544 = vmatpush3.bf16.msra.mxu1 %v541_v45 }
  0x53   :  { %518 = vmatprep.subr.bf16.mxu0 %v517_v27  ;;  %546 = vmatprep.subr.bf16.mxu1 %v545_v48 }
  0x56   :  { %520 = vmatpush3.bf16.msra.mxu0 %v517_v27  ;;  %548 = vmatpush3.bf16.msra.mxu1 %v545_v48 }
  0x57   :  { %550 = vmatprep.subr.bf16.mxu1 %v549_v51 }
  0x59   :  { %446 = vmatmul.mubr.f32.vlgmr.msra.gmra.mrb[0].mxu0 %v71_v28 }
  0x5a   :  { %448 = vmatprep.mubr.f32.mxu0 %v72_v29  ;;  %552 = vmatpush3.bf16.msra.mxu1 %v549_v51 }
  0x5d   :  { %449 = vmatmul.mubr.f32.gmra.mrb[2].mxu0 %v73_v30 }
 0x12c   :  { %v447_v53 = vpop.f32.mrb[0].mxu0 }
 0x12d   :  { %v169_v54 = vadd.f32 %v447_v53, %v371_v52  ;;  %v163_v55 = vpop.f32.mrb[1].mxu0 }
 0x12e   :  { %v164_v56 = vadd.f32 %v371_v52, %v163_v55 }
 0x12f   :  { %v187_v57 = vmul.f32 %v169_v54, %v169_v54  ;;  %v183_v22 = vmul.f32 0.5, %v169_v54 }
 0x130   :  { %v186_v58 = vmul.f32 %v164_v56, %v164_v56  ;;  %v450_v59 = vpop.f32.mrb[2].mxu0  ;;  %v182_v20 = vmul.f32 0.5, %v164_v56 }
 0x131   :  { %v191_v60 = vmul.f32 %v187_v57, %v169_v54  ;;  %v179_v61 = vadd.f32 %v450_v59, %v371_v52  ;;  %v173_v62 = vpop.f32.mrb[3].mxu0 }
 0x132   :  { %v174_v63 = vadd.f32 %v371_v52, %v173_v62  ;;  %v190_v0 = vmul.f32 %v186_v58, %v164_v56 }
 0x133   :  { %v195_v1 = vmul.f32 0.044715, %v191_v60  ;;  %v189_v2 = vmul.f32 %v179_v61, %v179_v61  ;;  %v185_v30 = vmul.f32 0.5, %v179_v61 }
 0x134   :  { %v188_v3 = vmul.f32 %v174_v63, %v174_v63  ;;  %v194_v4 = vmul.f32 0.044715, %v190_v0  ;;  %v184_v28 = vmul.f32 0.5, %v174_v63 }
 0x135   :  { %v199_v5 = vadd.f32 %v195_v1, %v169_v54  ;;  %v193_v6 = vmul.f32 %v189_v2, %v179_v61 }
 0x136   :  { %v192_v7 = vmul.f32 %v188_v3, %v174_v63  ;;  %v198_v8 = vadd.f32 %v194_v4, %v164_v56 }
 0x137   :  { %v203_v9 = vmul.f32 0.7978846, %v199_v5  ;;  %v197_v10 = vmul.f32 0.044715, %v193_v6 }
 0x138   :  { %v196_v11 = vmul.f32 0.044715, %v192_v7  ;;  %v202_v12 = vmul.f32 0.7978846, %v198_v8 }
 0x139   :  { %v201_v13 = vadd.f32 %v197_v10, %v179_v61  ;;  %559 = vtanh.f32 %v203_v9 }
 0x13a   :  { %v200_v14 = vadd.f32 %v196_v11, %v174_v63  ;;  %561 = vtanh.f32 %v202_v12 }
 0x13b   :  { %v205_v15 = vmul.f32 0.7978846, %v201_v13 }
 0x13c   :  { %v204_v16 = vmul.f32 0.7978846, %v200_v14 }
 0x13d   :  { %563 = vtanh.f32 %v205_v15 }
 0x13e   :  { %565 = vtanh.f32 %v204_v16 }
 0x143   :  { %v560_v17 = vpop.eup %559 }
 0x144   :  { %v562_v18 = vpop.eup %561  ;;  %v211_v19 = vadd.f32 1.0, %v560_v17 }
 0x145   :  { %v210_v21 = vadd.f32 1.0, %v562_v18 }
 0x146   :  { %v215_v26 = vmul.f32 %v211_v19, %v183_v22 }
 0x147   :  { %v564_v23 = vpop.eup %563  ;;  %v214_v24 = vmul.f32 %v210_v21, %v182_v20 }
 0x148   :  { %v566_v25 = vpop.eup %565  ;;  %v213_v27 = vadd.f32 1.0, %v564_v23 }
 0x149   :  { %483 = vmatprep.mubr.f32.mxu1 %v214_v24  ;;  %v212_v29 = vadd.f32 1.0, %v566_v25 }
 0x14a   :  { %484 = vmatmul.mubr.f32.vlgmr.msra.gmra.mrb[0].mxu1 %v215_v26  ;;  %v217_v32 = vmul.f32 %v213_v27, %v185_v30 }
 0x14b   :  { %v216_v31 = vmul.f32 %v212_v29, %v184_v28 }
 0x14d   :  { %486 = vmatprep.mubr.f32.mxu1 %v216_v31 }
 0x14e   :  { %487 = vmatmul.mubr.f32.gmra.mrb[2].mxu1 %v217_v32 }
 0x21d   :  { %v485_v34 = vpop.f32.mrb[0].mxu1 }
 0x21e   :  { %v346_v35 = vadd.f32 %v485_v34, %v372_v33  ;;  %v304_v36 = vpop.f32.mrb[1].mxu1 }
 0x21f   :  { %v345_v37 = vadd.f32 %v372_v33, %v304_v36 }
 0x220   :  { %350 = vst [vmem:[#allocation9 + $0x8] sm:$0xff] %v346_v35 }
 0x221   :  { %349 = vst [vmem:[#allocation9] sm:$0xff] %v345_v37  ;;  %v488_v38 = vpop.f32.mrb[2].mxu1 }
 0x222   :  { %v348_v39 = vadd.f32 %v488_v38, %v372_v33  ;;  %v314_v40 = vpop.f32.mrb[3].mxu1 }
 0x223   :  { %v347_v41 = vadd.f32 %v372_v33, %v314_v40 }
 0x224   :  { %352 = vst [vmem:[#allocation9 + $0x18] sm:$0xff] %v348_v39 }
 0x225   :  { %351 = vst [vmem:[#allocation9 + $0x10] sm:$0xff] %v347_v41 }
 0x226   :  { %644 = shalt.err (!%p641_p0)
}
 0x227   :  { %s645_s12 = scalar_lea.hbm %s775_s5, 512 }
 0x228   :  { %p646_p1 = scmp.ne.s32.totalorder %s775_s5, %s645_s12  ;;  %p649_p2 = scmp.lt.u32.totalorder %s645_s12, %s775_s5 }
 0x22a   :  { %p651_p3 = pnand %p649_p2, %p646_p1 }
 0x22c   :  { %654 = shalt.err (!%p651_p3)
}
 0x22d   :  { %364 = dma.vmem_to_hbm [thread:$0]  %s359_s9, 512, %s775_s5, [#allocation5], %s663_s30, %s663_s30, %s664_s6  }
 0x22e   :  { %659 = dma.done.wait [#allocation5], 512  }
 0x22f   :  { %660 = vsyncadd [#allocation5], 4294966784 }
 0x230   :  { %368 = vsyncpa [#allocation4], 1 }
 0x231   :  { %369 = vsyncpa [#allocation7], 1 }
 0x232   :  { %370 = vsyncpa [#allocation5], 1 }

</bundles_post_ra>
